<compile_context>
chip_gen: v6e
topology: v6e:2x2x1
jax: 0.10.0
libtpu: 0.0.40
codegen_flags: <defaults>
</compile_context>

<pallas_src>
import functools

import jax
import jax.numpy as jnp
from jax.experimental import pallas as pl
from jax.experimental.pallas import tpu as pltpu


def _brier_kernel(logit_ref, labels_ref, partial_ref, *, true_b, ragged):
    pid = pl.program_id(0)

    x = logit_ref[...].astype(jnp.float32)                      # (TB, C), f32 math
    TB, C = x.shape

    if ragged:
        # Mask padded rows of the last tile: neutralize garbage logits *before* the
        # exp so NaN/Inf padding can never pollute the reduction.
        row_ids = pid * TB + jax.lax.broadcasted_iota(jnp.int32, (TB, 1), 0)
        valid = row_ids < true_b                                 # (TB, 1)
        x = jnp.where(valid, x, 0.0)

    # Numerically-stable softmax along the class axis (dim=1).
    m = jnp.max(x, axis=1, keepdims=True)                        # (TB, 1)
    e = jnp.exp(x - m)                                           # (TB, C)  (EUP)
    denom = jnp.sum(e, axis=1, keepdims=True)                    # (TB, 1)  (XLU)
    soft = e * pl.reciprocal(denom, approx=True)                 # EUP vrcp slot

    # One-hot via iota comparison (equivalent of torch scatter_).
    # TODO(synk): labels stay in a (TB,1) VMEM block; SMEM scalar-prefetch would drop
    # the lane-sparse DMA but vector reads from SMEM are not robust, so keep VMEM.
    col = jax.lax.broadcasted_iota(jnp.int32, (TB, C), 1)
    onehot = (col == labels_ref[...]).astype(jnp.float32)        # labels (TB,1) bcast

    diff = soft - onehot
    if ragged:
        diff = jnp.where(valid, diff, 0.0)

    partial = jnp.sum(diff * diff)                               # scalar per tile
    # Lane-dense, aligned (1,8,128) store of the partial (wrapper reads [i,0,0]).
    partial_ref[...] = jnp.full(partial_ref.shape, partial, dtype=jnp.float32)


def brier_loss(logit, labels, *, block_rows=None):
    """logit: (B, C) float (f32 or bf16); labels: (B,) integers. Returns scalar f32."""
    B, C = logit.shape
    labels2 = labels.reshape(B, 1).astype(jnp.int32)
    itemsize = jnp.dtype(logit.dtype).itemsize

    if block_rows is None:
        # Keep the double-buffered logit tile within ~8 MiB so it fits the scoped
        # VMEM default on every generation (v5e/v6e 128 MiB, v7x 64 MiB).
        budget = 8 * 1024 * 1024
        block_rows = max(8, budget // max(2 * C * itemsize, 1))

    TB = min(B, block_rows)
    if TB < B:
        TB = max(8, (TB // 8) * 8)        # (8,128) tiling rule when not the full dim
    num_tiles = pl.cdiv(B, TB)
    ragged = (num_tiles * TB) != B

    kernel = functools.partial(_brier_kernel, true_b=B, ragged=ragged)

    grid_spec = pltpu.PrefetchScalarGridSpec(
        num_scalar_prefetch=0,
        grid=(num_tiles,),
        in_specs=[
            pl.BlockSpec((TB, C), lambda i: (i, 0)),
            pl.BlockSpec((TB, 1), lambda i: (i, 0)),
        ],
        out_specs=pl.BlockSpec((1, 8, 128), lambda i: (i, 0, 0)),
    )

    out = pl.pallas_call(
        kernel,
        out_shape=jax.ShapeDtypeStruct((num_tiles, 8, 128), jnp.float32),
        grid_spec=grid_spec,
        compiler_params=pltpu.CompilerParams(
            dimension_semantics=("parallel",),   # per-tile partials -> megacore OK
        ),
        cost_estimate=pl.CostEstimate(
            flops=6 * B * C,
            transcendentals=B * C,
            bytes_accessed=B * C * itemsize + B * 4 + num_tiles * 8 * 128 * 4,
        ),
    )(logit, labels2)

    partials = out[:, 0, 0]                      # (num_tiles,)
    return jnp.sum(partials) * (1.0 / (B * C))   # mean over all B*C elements (true B)


def brier_loss_ref(logit, labels):
    soft = jax.nn.softmax(logit.astype(jnp.float32), axis=1)
    onehot = jax.nn.one_hot(labels, logit.shape[1], dtype=jnp.float32)
    return jnp.mean((soft - onehot) ** 2)


if __name__ == "__main__":
    key = jax.random.PRNGKey(0)
    k1, k2, k3, k4 = jax.random.split(key, 4)

    # Primary small-shape test: batch=8, classes=16 (single tile).
    B, C = 8, 16
    logit = jax.random.normal(k1, (B, C), dtype=jnp.float32)
    labels = jax.random.randint(k2, (B,), 0, C, dtype=jnp.int32)

    loss = brier_loss(logit, labels)
    jax.block_until_ready(loss)
    ref = brier_loss_ref(logit, labels)
    assert jnp.allclose(loss, ref, rtol=5e-3, atol=1e-5), (loss, ref)

    # Gridded + ragged-last-tile test: B=20 with 8-row tiles -> 3 tiles, 4 padded rows.
    B2, C2 = 20, 16
    logit2 = jax.random.normal(k3, (B2, C2), dtype=jnp.float32)
    labels2 = jax.random.randint(k4, (B2,), 0, C2, dtype=jnp.int32)

    loss2 = brier_loss(logit2, labels2, block_rows=8)
    jax.block_until_ready(loss2)
    ref2 = brier_loss_ref(logit2, labels2)
    assert jnp.allclose(loss2, ref2, rtol=5e-3, atol=1e-5), (loss2, ref2)

    print("KERNEL_OK")
</pallas_src>

<mosaic_0001>
module attributes {stable_mosaic.version = 11 : i64} {
  func.func @_brier_kernel(%arg0: i32, %arg1: memref<8x16xf32, #tpu.memory_space<vmem>>, %arg2: memref<8x1xi32, #tpu.memory_space<vmem>>, %arg3: memref<1x8x128xf32, #tpu.memory_space<vmem>>) attributes {dimension_semantics = [#tpu.dimension_semantics<parallel>], iteration_bounds = array<i64: 1>, scalar_prefetch = 0 : i64, scratch_operands = 0 : i64, tpu.core_type = #tpu.core_type<tc>, window_params = [{transform_indices = @transform_0, window_bounds = array<i64: 8, 16>}, {transform_indices = @transform_1, window_bounds = array<i64: 8, 1>}, {transform_indices = @transform_2, window_bounds = array<i64: 1, 8, 128>}]} {
    %c0 = arith.constant 0 : index
    %c0_0 = arith.constant 0 : index
    %0 = vector.load %arg1[%c0, %c0_0] : memref<8x16xf32, #tpu.memory_space<vmem>>, vector<8x16xf32>
    %cst = arith.constant dense<0xFF800000> : vector<8xf32>
    %1 = vector.multi_reduction <maximumf>, %0, %cst [1] : vector<8x16xf32> to vector<8xf32>
    %2 = vector.shape_cast %1 : vector<8xf32> to vector<8x1xf32>
    %3 = vector.broadcast %2 : vector<8x1xf32> to vector<8x16xf32>
    %4 = arith.subf %0, %3 : vector<8x16xf32>
    %5 = math.exp %4 : vector<8x16xf32>
    %cst_1 = arith.constant dense<0.000000e+00> : vector<8xf32>
    %6 = vector.multi_reduction <add>, %5, %cst_1 [1] : vector<8x16xf32> to vector<8xf32>
    %7 = vector.shape_cast %6 : vector<8xf32> to vector<8x1xf32>
    %8 = tpu.reciprocal %7 {approx = true} : vector<8x1xf32> -> vector<8x1xf32>
    %9 = vector.broadcast %8 : vector<8x1xf32> to vector<8x16xf32>
    %10 = arith.mulf %5, %9 : vector<8x16xf32>
    %11 = tpu.iota {dimensions = array<i32: 1>} : vector<8x16xi32>
    %c0_2 = arith.constant 0 : index
    %c0_3 = arith.constant 0 : index
    %12 = vector.load %arg2[%c0_2, %c0_3] : memref<8x1xi32, #tpu.memory_space<vmem>>, vector<8x1xi32>
    %13 = vector.broadcast %12 : vector<8x1xi32> to vector<8x16xi32>
    %14 = arith.cmpi eq, %11, %13 : vector<8x16xi32>
    %15 = arith.extui %14 : vector<8x16xi1> to vector<8x16xi32>
    %16 = arith.sitofp %15 : vector<8x16xi32> to vector<8x16xf32>
    %17 = arith.subf %10, %16 : vector<8x16xf32>
    %18 = arith.mulf %17, %17 : vector<8x16xf32>
    %19 = vector.shape_cast %18 : vector<8x16xf32> to vector<1x8x16xf32>
    %cst_4 = arith.constant dense<0.000000e+00> : vector<1xf32>
    %20 = vector.multi_reduction <add>, %19, %cst_4 [1, 2] : vector<1x8x16xf32> to vector<1xf32>
    %21 = vector.shape_cast %20 : vector<1xf32> to vector<1x1x1xf32>
    %22 = vector.extract %21[0, 0, 0] : f32 from vector<1x1x1xf32>
    %23 = vector.broadcast %22 : f32 to vector<1x8x128xf32>
    %c0_5 = arith.constant 0 : index
    %c0_6 = arith.constant 0 : index
    %c0_7 = arith.constant 0 : index
    %24 = vector.load %arg3[%c0_5, %c0_6, %c0_7] : memref<1x8x128xf32, #tpu.memory_space<vmem>>, vector<1x8x128xf32>
    tpu.vector_store %arg3[%c0_5, %c0_6, %c0_7], %23 {strides = array<i32>} : memref<1x8x128xf32, #tpu.memory_space<vmem>>, vector<1x8x128xf32>,
    return
  }
  func.func @transform_0(%arg0: i32) -> (i32, i32) {
    %c0_i32 = arith.constant 0 : i32
    %c0_i32_0 = arith.constant 0 : i32
    return %arg0, %c0_i32 : i32, i32
  }
  func.func @transform_1(%arg0: i32) -> (i32, i32) {
    %c0_i32 = arith.constant 0 : i32
    %c0_i32_0 = arith.constant 0 : i32
    return %arg0, %c0_i32 : i32, i32
  }
  func.func @transform_2(%arg0: i32) -> (i32, i32, i32) {
    %c0_i32 = arith.constant 0 : i32
    %c0_i32_0 = arith.constant 0 : i32
    %c0_i32_1 = arith.constant 0 : i32
    return %arg0, %c0_i32, %c0_i32_0 : i32, i32, i32
  }
}

</mosaic_0001>

<bundles_post_ra>
// kernel: tpu_custom_call.1
= control target key start
LH: loop header
LB: loop body
LE: loop exit
PB: predicated region body
PF: predicated region fallthrough
CT: control target
= control target key end

     0   :  { %vm13_vm0 = vcmask 130048   ;;  %s126_s0 = inlined_call_operand.vmem [shape: f32[8,16], index: 0, kind: input, shape index: {}]   ;;  %s127_s1 = inlined_call_operand.vmem [shape: s32[8,1], index: 1, kind: input, shape index: {}]   ;;  %s128_s2 = inlined_call_operand.hbm [shape: f32[1,8,128], index: 2, kind: output, shape index: {}]  }
   0x1   :  { %v12_v0 = vld [vmem:[%s126_s0] sm:$0xff] }
   0x2   :  { %7 = vsyncpa [#allocation3], 0  ;;  %v14_v1 = vsel %vm13_vm0, %v12_v0, -inf  ;;  %v27_v2 = vld [vmem:[%s127_s1] sm:$0xff]  ;;  %v96_v3 = vmov 0   ;;  %v25_v10 = vlaneseq  ;;  %v97_v14 = vmov 0.0  }
   0x3   :  { %15 = vmax.xlane.f32.xlu0 %v14_v1  ;;  %68 = vset.pattern.permute.xlu1 %v96_v3  ;;  %s98_s0 = smov [#allocation2]  }
   0x4   :  { %69 = vset.pattern.permute.xlu0 %v96_v3  ;;  %29 = vperm.xlu1 %68, %v27_v2   ;;  %v26_v11 = vand.u32 127, %v25_v10  ;;  %s54_s1 = sshll.u32 %s98_s0, 4  ;;  %s55_s1 = int_to_ptr.vmem [resolvable:$true] %s54_s1 }
   0x5   :  { %s74_s14 = scalar_lea.vmem %s55_s1, 128  ;;  %p79_p1 = scmp.lt.s32.totalorder %s55_s1, %s55_s1 }
   0x6   :  { %p75_p0 = scmp.ne.s32.totalorder %s55_s1, %s74_s14  ;;  %p80_p2 = scmp.lt.s32.totalorder %s74_s14, %s74_s14 }
   0x8   :  { %p81_p3 = por %p80_p2, %p79_p1 }
   0xa   :  { %p82_p4 = pnand %p81_p3, %p75_p0 }
  0x7f   :  { %v30_v12 = vpop.permute.xlu1 %29 }
  0x80   :  { %vm31_vm1 = vcmp.eq.s32.totalorder %v26_v11, %v30_v12 }
  0x81   :  { %v62_v15 = vsel %vm31_vm1, 1.0, %v97_v14 }
  0x8c   :  { %v16_v4 = vpop.xlane.xlu0 %15 }
  0x8d   :  { %v17_v5 = vsub.f32 %v12_v0, %v16_v4 }
  0x8f   :  { %v18_v6 = vmul.f32 1.442695, %v17_v5 }
  0x91   :  { %70 = vpow2.f32 %v18_v6 }
  0x9e   :  { %v71_v7 = vpop.eup %70 }
  0x9f   :  { %v20_v8 = vsel %vm13_vm0, %v71_v7, 0.0 }
  0xa0   :  { %21 = vadd.xlane.f32.xlu0 %v20_v8 }
 0x129   :  { %v22_v9 = vpop.xlane.xlu0 %21 }
 0x12a   :  { %72 = vrcp.f32 %v22_v9 }
 0x137   :  { %v73_v13 = vpop.eup %72 }
 0x138   :  { %v24_v16 = vmul.f32 %v73_v13, %v71_v7 }
 0x13a   :  { %v34_v17 = vsub.f32 %v24_v16, %v62_v15 }
 0x13c   :  { %v35_v18 = vmul.f32 %v34_v17, %v34_v17 }
 0x13e   :  { %v36_v19 = vsel %vm13_vm0, %v35_v18, 0.0 }
 0x13f   :  { %37 = vadd.xlane.f32.xlu1 %v36_v19 }
 0x1c8   :  { %v38_v20 = vpop.xlane.xlu1 %37 }
 0x1c9   :  { %v39_v21 = vrot.slane %v38_v20, 4 }
 0x1cb   :  { %v40_v22 = vadd.f32 %v39_v21, %v38_v20 }
 0x1cd   :  { %v41_v23 = vrot.slane %v40_v22, 2 }
 0x1cf   :  { %v42_v24 = vadd.f32 %v41_v23, %v40_v22 }
 0x1d1   :  { %v43_v25 = vrot.slane %v42_v24, 1 }
 0x1d3   :  { %v44_v26 = vadd.f32 %v43_v25, %v42_v24 }
 0x1d5   :  { %63 = vpush %v44_v26 }
 0x206   :  { %s64_s13 = spop %63 }
 0x207   :  { %v46_v27 = vstv %s64_s13 }
 0x208   :  { %47 = vst [vmem:[#allocation2] sm:$0xff] %v46_v27 }
 0x209   :  { %85 = shalt.err (!%p82_p4)
}
 0x20a   :  { %57 = dma.vmem_to_hbm [thread:$0]  %s55_s1, 128, %s128_s2, [#allocation3]  }
 0x20b   :  { %94 = dma.done.wait [#allocation3], 128  }
 0x20c   :  { %95 = vsyncadd [#allocation3], 4294967168 }
 0x20d   :  { %61 = vsyncpa [#allocation3], 1 }

</bundles_post_ra>
